<compile_context>
chip_gen: v7x
topology: tpu7x:2x2x1
jax: 0.10.0
libtpu: 0.0.40
codegen_flags: <defaults>
</compile_context>

<pallas_src>
import functools

import jax
import jax.numpy as jnp
from jax import lax
from jax.experimental import pallas as pl
from jax.experimental.pallas import tpu as pltpu


def _round_up(x, m):
    return ((x + m - 1) // m) * m


def _bert_mix_self_output_kernel(h_ref,      # (TM, H) hidden_states tile
                                 x_ref,      # (TM, H) residual tile
                                 w_ref,      # (H, H)  dense weight, pre-transposed (y = h @ w)
                                 b_ref,      # (1, H)  dense bias (pre-scaled by `a` if ratio given)
                                 g_ref,      # (1, H)  LayerNorm gamma
                                 beta_ref,   # (1, H)  LayerNorm beta
                                 o_ref,      # (TM, H) output tile
                                 *,
                                 eps, inv_h, a, b, matmul_dtype):
    # Dense: MXU matmul with f32 accumulation.  Optional operand cast (v5e bf16 path).
    h = h_ref[...]
    w = w_ref[...]
    if matmul_dtype is not None:
        h = h.astype(matmul_dtype)
        w = w.astype(matmul_dtype)
    y = jnp.dot(h, w, preferred_element_type=jnp.float32)

    # TODO(synk): dropout is identity in eval mode; training-mode dropout would
    # need pltpu.prng_seed / prng_random_bits masking and is intentionally omitted.

    x = x_ref[...].astype(jnp.float32)
    bias = b_ref[...].astype(jnp.float32)
    if a is None:
        # ratio=None path: plain residual, no scalar multiplies at all.
        z = y + x + bias
    else:
        # ratio path: bias already holds ratio*b, so z = a*y + b*x + bias.
        z = a * y + b * x + bias

    # LayerNorm over the hidden (lane) dim — one-pass mean/var, f32 epilogue.
    s1 = jnp.sum(z, axis=-1, keepdims=True)
    s2 = jnp.sum(z * z, axis=-1, keepdims=True)
    mean = s1 * inv_h
    var = jnp.maximum(s2 * inv_h - mean * mean, 0.0)
    inv = lax.rsqrt(var + eps)                                     # EUP slot
    gamma = g_ref[...].astype(jnp.float32)
    beta = beta_ref[...].astype(jnp.float32)
    o_ref[...] = ((z - mean) * (inv * gamma) + beta).astype(o_ref.dtype)


def bert_mix_self_output(hidden_states, input_tensor, params, ratio=None, *,
                         eps=1e-12, tile_rows=512, act_buffers=None,
                         matmul_dtype=None):
    """hidden_states, input_tensor: [batch, seq, hidden].  ratio is a static Python float or None."""
    B, S, H = hidden_states.shape
    rows = B * S

    h2 = hidden_states.reshape(rows, H)
    x2 = input_tensor.reshape(rows, H)

    # Weight stored pre-transposed ([in, out]) at init so no per-call HBM transpose.
    w_t = params.get("dense_wt")
    if w_t is None:
        w_t = params["dense_w"].T  # fallback from PyTorch [out, in] layout
    bias = params["dense_b"].reshape(1, H)
    gamma = params["ln_w"].reshape(1, H)
    beta = params["ln_b"].reshape(1, H)

    if ratio is None:
        a = b = None
    else:
        a = float(ratio)
        b = 1.0 - a
        # Fold the `a` scale into the bias vector once (tiny (1,H) op outside the kernel).
        bias = a * bias.astype(jnp.float32)

    # Row tiling: dtype-aware sublane alignment, no input padding (ragged last block).
    itemsize = jnp.dtype(hidden_states.dtype).itemsize
    sub = max(8, 32 // itemsize)              # f32: 8, bf16: 16, int8/fp8: 32
    tm = min(_round_up(tile_rows, sub), _round_up(rows, sub))
    grid = (pl.cdiv(rows, tm),)

    # VMEM budget from actual tile sizes, capped at 75% of physical VMEM.
    n_act_buf = act_buffers if act_buffers is not None else 2
    w_bytes = w_t.size * jnp.dtype(w_t.dtype).itemsize
    act_bytes = tm * H * itemsize
    vmem_est = 2 * w_bytes + (2 * n_act_buf + 2) * act_bytes + 16 * H * 4
    try:
        phys = int(getattr(pltpu.get_tpu_info(), "vmem_capacity_bytes", 64 * 2 ** 20))
    except Exception:
        phys = 64 * 2 ** 20
    cap = max(phys * 3 // 4, 32 * 2 ** 20)    # ~48 MiB on v7x, ~96 MiB on v5e/v6e
    vmem_limit_bytes = int(min(max(int(1.5 * vmem_est), 32 * 2 ** 20), cap))

    cost = pl.CostEstimate(
        flops=2 * rows * H * H,
        transcendentals=0,
        bytes_accessed=(2 * rows * H * itemsize                                  # h in, out
                        + rows * H * jnp.dtype(input_tensor.dtype).itemsize       # residual in
                        + w_bytes
                        + 3 * H * 4),
    )

    kernel = functools.partial(_bert_mix_self_output_kernel,
                               eps=float(eps), inv_h=1.0 / H, a=a, b=b,
                               matmul_dtype=matmul_dtype)

    def run(single_buffer_consts):
        const_kw = {"pipeline_mode": pl.Buffered(1)} if single_buffer_consts else {}
        act_kw = {"pipeline_mode": pl.Buffered(int(act_buffers))} if act_buffers else {}
        in_specs = [
            pl.BlockSpec((tm, H), lambda i: (i, 0), **act_kw),     # hidden_states tile
            pl.BlockSpec((tm, H), lambda i: (i, 0), **act_kw),     # residual tile
            pl.BlockSpec((H, H), lambda i: (0, 0), **const_kw),    # W^T (resident)
            pl.BlockSpec((1, H), lambda i: (0, 0), **const_kw),    # bias
            pl.BlockSpec((1, H), lambda i: (0, 0), **const_kw),    # gamma
            pl.BlockSpec((1, H), lambda i: (0, 0), **const_kw),    # beta
        ]
        return pl.pallas_call(
            kernel,
            out_shape=jax.ShapeDtypeStruct((rows, H), hidden_states.dtype),
            grid=grid,
            in_specs=in_specs,
            out_specs=pl.BlockSpec((tm, H), lambda i: (i, 0)),
            compiler_params=pltpu.CompilerParams(
                dimension_semantics=("parallel",),
                vmem_limit_bytes=vmem_limit_bytes,
            ),
            cost_estimate=cost,
        )(h2, x2, w_t, bias, gamma, beta)

    try:
        out2 = run(True)
    except Exception:
        # Fallback if pipeline_mode=pl.Buffered(1) is rejected by this jax version.
        out2 = run(False)

    return out2.reshape(B, S, H)


def init_params(key, hidden_size, dtype=jnp.float32):
    k1, k2 = jax.random.split(key, 2)
    scale = 1.0 / jnp.sqrt(hidden_size)
    dense_w = jax.random.uniform(k1, (hidden_size, hidden_size),
                                 minval=-scale, maxval=scale, dtype=dtype)
    return {
        "dense_w": dense_w,                     # PyTorch layout [out, in] (reference)
        "dense_wt": dense_w.T,                  # kernel layout [in, out], transposed ONCE
        "dense_b": jax.random.uniform(k2, (hidden_size,),
                                      minval=-scale, maxval=scale, dtype=dtype),
        "ln_w": jnp.ones((hidden_size,), dtype=dtype),
        "ln_b": jnp.zeros((hidden_size,), dtype=dtype),
    }


def _reference(hidden_states, input_tensor, params, ratio=None, eps=1e-12):
    y = jnp.einsum("bsh,oh->bso", hidden_states, params["dense_w"]) + params["dense_b"]
    if ratio is not None:
        z = ratio * y + (1.0 - ratio) * input_tensor
    else:
        z = y + input_tensor
    mean = jnp.mean(z, axis=-1, keepdims=True)
    var = jnp.mean((z - mean) ** 2, axis=-1, keepdims=True)
    return (z - mean) * lax.rsqrt(var + eps) * params["ln_w"] + params["ln_b"]


if __name__ == "__main__":
    key = jax.random.PRNGKey(0)
    B, S, H = 2, 16, 128  # batch, seq, hidden

    k_params, k_h, k_x = jax.random.split(key, 3)
    params = init_params(k_params, H)
    hidden_states = jax.random.normal(k_h, (B, S, H), dtype=jnp.float32)
    input_tensor = jax.random.normal(k_x, (B, S, H), dtype=jnp.float32)

    # Case 1: ratio provided (mixing path)
    out_mix = jax.block_until_ready(
        bert_mix_self_output(hidden_states, input_tensor, params, ratio=0.7))
    ref_mix = _reference(hidden_states, input_tensor, params, ratio=0.7)
    assert jnp.allclose(out_mix, ref_mix, atol=1e-4, rtol=1e-4)

    # Case 2: ratio=None (plain residual path)
    out_plain = jax.block_until_ready(
        bert_mix_self_output(hidden_states, input_tensor, params, ratio=None))
    ref_plain = _reference(hidden_states, input_tensor, params, ratio=None)
    assert jnp.allclose(out_plain, ref_plain, atol=1e-4, rtol=1e-4)

    # Case 3: ragged last block (rows % tm != 0) — no jnp.pad path.
    hs_r = jax.random.normal(k_h, (2, 20, H), dtype=jnp.float32)
    xt_r = jax.random.normal(k_x, (2, 20, H), dtype=jnp.float32)
    out_r = jax.block_until_ready(
        bert_mix_self_output(hs_r, xt_r, params, ratio=0.3, tile_rows=16))
    ref_r = _reference(hs_r, xt_r, params, ratio=0.3)
    assert jnp.allclose(out_r, ref_r, atol=1e-4, rtol=1e-4)

    # Case 4: bf16 end-to-end (native-dtype MXU path), looser tolerance.
    params_bf16 = {k: v.astype(jnp.bfloat16) for k, v in params.items()}
    out_bf16 = jax.block_until_ready(
        bert_mix_self_output(hidden_states.astype(jnp.bfloat16),
                             input_tensor.astype(jnp.bfloat16),
                             params_bf16, ratio=0.7))
    assert jnp.allclose(out_bf16.astype(jnp.float32), ref_mix, atol=5e-2, rtol=5e-2)

    print("KERNEL_OK")
</pallas_src>

<mosaic_0001>
module attributes {stable_mosaic.version = 11 : i64} {
  func.func @_bert_mix_self_output_kernel(%arg0: i32, %arg1: memref<32x128xf32, #tpu.memory_space<vmem>>, %arg2: memref<32x128xf32, #tpu.memory_space<vmem>>, %arg3: memref<128x128xf32, #tpu.memory_space<vmem>>, %arg4: memref<1x128xf32, #tpu.memory_space<vmem>>, %arg5: memref<1x128xf32, #tpu.memory_space<vmem>>, %arg6: memref<1x128xf32, #tpu.memory_space<vmem>>, %arg7: memref<32x128xf32, #tpu.memory_space<vmem>>) attributes {dimension_semantics = [#tpu.dimension_semantics<parallel>], iteration_bounds = array<i64: 1>, scalar_prefetch = 0 : i64, scratch_operands = 0 : i64, tpu.core_type = #tpu.core_type<tc>, window_params = [{transform_indices = @transform_0, window_bounds = array<i64: 32, 128>}, {transform_indices = @transform_1, window_bounds = array<i64: 32, 128>}, {pipeline_mode = #tpu.pipeline_mode<synchronous>, transform_indices = @transform_2, window_bounds = array<i64: 128, 128>}, {pipeline_mode = #tpu.pipeline_mode<synchronous>, transform_indices = @transform_3, window_bounds = array<i64: 1, 128>}, {pipeline_mode = #tpu.pipeline_mode<synchronous>, transform_indices = @transform_4, window_bounds = array<i64: 1, 128>}, {pipeline_mode = #tpu.pipeline_mode<synchronous>, transform_indices = @transform_5, window_bounds = array<i64: 1, 128>}, {transform_indices = @transform_6, window_bounds = array<i64: 32, 128>}]} {
    %c0 = arith.constant 0 : index
    %c0_0 = arith.constant 0 : index
    %0 = vector.load %arg1[%c0, %c0_0] : memref<32x128xf32, #tpu.memory_space<vmem>>, vector<32x128xf32>
    %c0_1 = arith.constant 0 : index
    %c0_2 = arith.constant 0 : index
    %1 = vector.load %arg3[%c0_1, %c0_2] : memref<128x128xf32, #tpu.memory_space<vmem>>, vector<128x128xf32>
    %cst = arith.constant dense<0.000000e+00> : vector<32x128xf32>
    %2 = tpu.matmul %0, %1, %cst {dimension_numbers = #tpu.dot_dimension_numbers<[1], [0], [0], [1], [0, 0, 1, 1], [], []>} : vector<32x128xf32>, vector<128x128xf32>, vector<32x128xf32> -> vector<32x128xf32>
    %c0_3 = arith.constant 0 : index
    %c0_4 = arith.constant 0 : index
    %3 = vector.load %arg2[%c0_3, %c0_4] : memref<32x128xf32, #tpu.memory_space<vmem>>, vector<32x128xf32>
    %c0_5 = arith.constant 0 : index
    %c0_6 = arith.constant 0 : index
    %4 = vector.load %arg4[%c0_5, %c0_6] : memref<1x128xf32, #tpu.memory_space<vmem>>, vector<1x128xf32>
    %cst_7 = arith.constant 0.699999988 : f32
    %5 = vector.broadcast %cst_7 : f32 to vector<32x128xf32>
    %6 = arith.mulf %5, %2 : vector<32x128xf32>
    %cst_8 = arith.constant 3.000000e-01 : f32
    %7 = vector.broadcast %cst_8 : f32 to vector<32x128xf32>
    %8 = arith.mulf %7, %3 : vector<32x128xf32>
    %9 = arith.addf %6, %8 : vector<32x128xf32>
    %10 = vector.broadcast %4 : vector<1x128xf32> to vector<32x128xf32>
    %11 = arith.addf %9, %10 : vector<32x128xf32>
    %cst_9 = arith.constant dense<0.000000e+00> : vector<32xf32>
    %12 = vector.multi_reduction <add>, %11, %cst_9 [1] : vector<32x128xf32> to vector<32xf32>
    %13 = vector.shape_cast %12 : vector<32xf32> to vector<32x1xf32>
    %14 = arith.mulf %11, %11 : vector<32x128xf32>
    %cst_10 = arith.constant dense<0.000000e+00> : vector<32xf32>
    %15 = vector.multi_reduction <add>, %14, %cst_10 [1] : vector<32x128xf32> to vector<32xf32>
    %16 = vector.shape_cast %15 : vector<32xf32> to vector<32x1xf32>
    %cst_11 = arith.constant 7.812500e-03 : f32
    %17 = vector.broadcast %cst_11 : f32 to vector<32x1xf32>
    %18 = arith.mulf %13, %17 : vector<32x1xf32>
    %cst_12 = arith.constant 7.812500e-03 : f32
    %19 = vector.broadcast %cst_12 : f32 to vector<32x1xf32>
    %20 = arith.mulf %16, %19 : vector<32x1xf32>
    %21 = arith.mulf %18, %18 : vector<32x1xf32>
    %22 = arith.subf %20, %21 : vector<32x1xf32>
    %cst_13 = arith.constant 0.000000e+00 : f32
    %23 = vector.broadcast %cst_13 : f32 to vector<32x1xf32>
    %24 = arith.maximumf %22, %23 : vector<32x1xf32>
    %cst_14 = arith.constant 9.99999996E-13 : f32
    %25 = vector.broadcast %cst_14 : f32 to vector<32x1xf32>
    %26 = arith.addf %24, %25 : vector<32x1xf32>
    %27 = math.rsqrt %26 : vector<32x1xf32>
    %c0_15 = arith.constant 0 : index
    %c0_16 = arith.constant 0 : index
    %28 = vector.load %arg5[%c0_15, %c0_16] : memref<1x128xf32, #tpu.memory_space<vmem>>, vector<1x128xf32>
    %c0_17 = arith.constant 0 : index
    %c0_18 = arith.constant 0 : index
    %29 = vector.load %arg6[%c0_17, %c0_18] : memref<1x128xf32, #tpu.memory_space<vmem>>, vector<1x128xf32>
    %30 = vector.broadcast %18 : vector<32x1xf32> to vector<32x128xf32>
    %31 = arith.subf %11, %30 : vector<32x128xf32>
    %32 = vector.broadcast %27 : vector<32x1xf32> to vector<32x128xf32>
    %33 = vector.broadcast %28 : vector<1x128xf32> to vector<32x128xf32>
    %34 = arith.mulf %32, %33 : vector<32x128xf32>
    %35 = arith.mulf %31, %34 : vector<32x128xf32>
    %36 = vector.broadcast %29 : vector<1x128xf32> to vector<32x128xf32>
    %37 = arith.addf %35, %36 : vector<32x128xf32>
    %c0_19 = arith.constant 0 : index
    %c0_20 = arith.constant 0 : index
    %38 = vector.load %arg7[%c0_19, %c0_20] : memref<32x128xf32, #tpu.memory_space<vmem>>, vector<32x128xf32>
    tpu.vector_store %arg7[%c0_19, %c0_20], %37 {strides = array<i32>} : memref<32x128xf32, #tpu.memory_space<vmem>>, vector<32x128xf32>,
    return
  }
  func.func @transform_0(%arg0: i32) -> (i32, i32) {
    %c0_i32 = arith.constant 0 : i32
    %c0_i32_0 = arith.constant 0 : i32
    return %arg0, %c0_i32 : i32, i32
  }
  func.func @transform_1(%arg0: i32) -> (i32, i32) {
    %c0_i32 = arith.constant 0 : i32
    %c0_i32_0 = arith.constant 0 : i32
    return %arg0, %c0_i32 : i32, i32
  }
  func.func @transform_2(%arg0: i32) -> (i32, i32) {
    %c0_i32 = arith.constant 0 : i32
    %c0_i32_0 = arith.constant 0 : i32
    %c0_i32_1 = arith.constant 0 : i32
    return %c0_i32, %c0_i32_0 : i32, i32
  }
  func.func @transform_3(%arg0: i32) -> (i32, i32) {
    %c0_i32 = arith.constant 0 : i32
    %c0_i32_0 = arith.constant 0 : i32
    %c0_i32_1 = arith.constant 0 : i32
    return %c0_i32, %c0_i32_0 : i32, i32
  }
  func.func @transform_4(%arg0: i32) -> (i32, i32) {
    %c0_i32 = arith.constant 0 : i32
    %c0_i32_0 = arith.constant 0 : i32
    %c0_i32_1 = arith.constant 0 : i32
    return %c0_i32, %c0_i32_0 : i32, i32
  }
  func.func @transform_5(%arg0: i32) -> (i32, i32) {
    %c0_i32 = arith.constant 0 : i32
    %c0_i32_0 = arith.constant 0 : i32
    %c0_i32_1 = arith.constant 0 : i32
    return %c0_i32, %c0_i32_0 : i32, i32
  }
  func.func @transform_6(%arg0: i32) -> (i32, i32) {
    %c0_i32 = arith.constant 0 : i32
    %c0_i32_0 = arith.constant 0 : i32
    return %arg0, %c0_i32 : i32, i32
  }
}

module attributes {stable_mosaic.version = 11 : i64} {
  func.func @_bert_mix_self_output_kernel(%arg0: i32, %arg1: memref<32x128xf32, #tpu.memory_space<vmem>>, %arg2: memref<32x128xf32, #tpu.memory_space<vmem>>, %arg3: memref<128x128xf32, #tpu.memory_space<vmem>>, %arg4: memref<1x128xf32, #tpu.memory_space<vmem>>, %arg5: memref<1x128xf32, #tpu.memory_space<vmem>>, %arg6: memref<1x128xf32, #tpu.memory_space<vmem>>, %arg7: memref<32x128xf32, #tpu.memory_space<vmem>>) attributes {dimension_semantics = [#tpu.dimension_semantics<parallel>], iteration_bounds = array<i64: 1>, scalar_prefetch = 0 : i64, scratch_operands = 0 : i64, tpu.core_type = #tpu.core_type<tc>, window_params = [{transform_indices = @transform_0, window_bounds = array<i64: 32, 128>}, {transform_indices = @transform_1, window_bounds = array<i64: 32, 128>}, {pipeline_mode = #tpu.pipeline_mode<synchronous>, transform_indices = @transform_2, window_bounds = array<i64: 128, 128>}, {pipeline_mode = #tpu.pipeline_mode<synchronous>, transform_indices = @transform_3, window_bounds = array<i64: 1, 128>}, {pipeline_mode = #tpu.pipeline_mode<synchronous>, transform_indices = @transform_4, window_bounds = array<i64: 1, 128>}, {pipeline_mode = #tpu.pipeline_mode<synchronous>, transform_indices = @transform_5, window_bounds = array<i64: 1, 128>}, {transform_indices = @transform_6, window_bounds = array<i64: 32, 128>}]} {
    %c0 = arith.constant 0 : index
    %c0_0 = arith.constant 0 : index
    %0 = vector.load %arg1[%c0, %c0_0] : memref<32x128xf32, #tpu.memory_space<vmem>>, vector<32x128xf32>
    %c0_1 = arith.constant 0 : index
    %c0_2 = arith.constant 0 : index
    %1 = vector.load %arg3[%c0_1, %c0_2] : memref<128x128xf32, #tpu.memory_space<vmem>>, vector<128x128xf32>
    %cst = arith.constant dense<0.000000e+00> : vector<32x128xf32>
    %2 = tpu.matmul %0, %1, %cst {dimension_numbers = #tpu.dot_dimension_numbers<[1], [0], [0], [1], [0, 0, 1, 1], [], []>} : vector<32x128xf32>, vector<128x128xf32>, vector<32x128xf32> -> vector<32x128xf32>
    %c0_3 = arith.constant 0 : index
    %c0_4 = arith.constant 0 : index
    %3 = vector.load %arg2[%c0_3, %c0_4] : memref<32x128xf32, #tpu.memory_space<vmem>>, vector<32x128xf32>
    %c0_5 = arith.constant 0 : index
    %c0_6 = arith.constant 0 : index
    %4 = vector.load %arg4[%c0_5, %c0_6] : memref<1x128xf32, #tpu.memory_space<vmem>>, vector<1x128xf32>
    %cst_7 = arith.constant 0.699999988 : f32
    %5 = vector.broadcast %cst_7 : f32 to vector<32x128xf32>
    %6 = arith.mulf %5, %2 : vector<32x128xf32>
    %cst_8 = arith.constant 3.000000e-01 : f32
    %7 = vector.broadcast %cst_8 : f32 to vector<32x128xf32>
    %8 = arith.mulf %7, %3 : vector<32x128xf32>
    %9 = arith.addf %6, %8 : vector<32x128xf32>
    %10 = vector.broadcast %4 : vector<1x128xf32> to vector<32x128xf32>
    %11 = arith.addf %9, %10 : vector<32x128xf32>
    %cst_9 = arith.constant dense<0.000000e+00> : vector<32xf32>
    %12 = vector.multi_reduction <add>, %11, %cst_9 [1] : vector<32x128xf32> to vector<32xf32>
    %13 = vector.shape_cast %12 : vector<32xf32> to vector<32x1xf32>
    %14 = arith.mulf %11, %11 : vector<32x128xf32>
    %cst_10 = arith.constant dense<0.000000e+00> : vector<32xf32>
    %15 = vector.multi_reduction <add>, %14, %cst_10 [1] : vector<32x128xf32> to vector<32xf32>
    %16 = vector.shape_cast %15 : vector<32xf32> to vector<32x1xf32>
    %cst_11 = arith.constant 7.812500e-03 : f32
    %17 = vector.broadcast %cst_11 : f32 to vector<32x1xf32>
    %18 = arith.mulf %13, %17 : vector<32x1xf32>
    %cst_12 = arith.constant 7.812500e-03 : f32
    %19 = vector.broadcast %cst_12 : f32 to vector<32x1xf32>
    %20 = arith.mulf %16, %19 : vector<32x1xf32>
    %21 = arith.mulf %18, %18 : vector<32x1xf32>
    %22 = arith.subf %20, %21 : vector<32x1xf32>
    %cst_13 = arith.constant 0.000000e+00 : f32
    %23 = vector.broadcast %cst_13 : f32 to vector<32x1xf32>
    %24 = arith.maximumf %22, %23 : vector<32x1xf32>
    %cst_14 = arith.constant 9.99999996E-13 : f32
    %25 = vector.broadcast %cst_14 : f32 to vector<32x1xf32>
    %26 = arith.addf %24, %25 : vector<32x1xf32>
    %27 = math.rsqrt %26 : vector<32x1xf32>
    %c0_15 = arith.constant 0 : index
    %c0_16 = arith.constant 0 : index
    %28 = vector.load %arg5[%c0_15, %c0_16] : memref<1x128xf32, #tpu.memory_space<vmem>>, vector<1x128xf32>
    %c0_17 = arith.constant 0 : index
    %c0_18 = arith.constant 0 : index
    %29 = vector.load %arg6[%c0_17, %c0_18] : memref<1x128xf32, #tpu.memory_space<vmem>>, vector<1x128xf32>
    %30 = vector.broadcast %18 : vector<32x1xf32> to vector<32x128xf32>
    %31 = arith.subf %11, %30 : vector<32x128xf32>
    %32 = vector.broadcast %27 : vector<32x1xf32> to vector<32x128xf32>
    %33 = vector.broadcast %28 : vector<1x128xf32> to vector<32x128xf32>
    %34 = arith.mulf %32, %33 : vector<32x128xf32>
    %35 = arith.mulf %31, %34 : vector<32x128xf32>
    %36 = vector.broadcast %29 : vector<1x128xf32> to vector<32x128xf32>
    %37 = arith.addf %35, %36 : vector<32x128xf32>
    %c0_19 = arith.constant 0 : index
    %c0_20 = arith.constant 0 : index
    %38 = vector.load %arg7[%c0_19, %c0_20] : memref<32x128xf32, #tpu.memory_space<vmem>>, vector<32x128xf32>
    tpu.vector_store %arg7[%c0_19, %c0_20], %37 {strides = array<i32>} : memref<32x128xf32, #tpu.memory_space<vmem>>, vector<32x128xf32>,
    return
  }
  func.func @transform_0(%arg0: i32) -> (i32, i32) {
    %c0_i32 = arith.constant 0 : i32
    %c0_i32_0 = arith.constant 0 : i32
    return %arg0, %c0_i32 : i32, i32
  }
  func.func @transform_1(%arg0: i32) -> (i32, i32) {
    %c0_i32 = arith.constant 0 : i32
    %c0_i32_0 = arith.constant 0 : i32
    return %arg0, %c0_i32 : i32, i32
  }
  func.func @transform_2(%arg0: i32) -> (i32, i32) {
    %c0_i32 = arith.constant 0 : i32
    %c0_i32_0 = arith.constant 0 : i32
    %c0_i32_1 = arith.constant 0 : i32
    return %c0_i32, %c0_i32_0 : i32, i32
  }
  func.func @transform_3(%arg0: i32) -> (i32, i32) {
    %c0_i32 = arith.constant 0 : i32
    %c0_i32_0 = arith.constant 0 : i32
    %c0_i32_1 = arith.constant 0 : i32
    return %c0_i32, %c0_i32_0 : i32, i32
  }
  func.func @transform_4(%arg0: i32) -> (i32, i32) {
    %c0_i32 = arith.constant 0 : i32
    %c0_i32_0 = arith.constant 0 : i32
    %c0_i32_1 = arith.constant 0 : i32
    return %c0_i32, %c0_i32_0 : i32, i32
  }
  func.func @transform_5(%arg0: i32) -> (i32, i32) {
    %c0_i32 = arith.constant 0 : i32
    %c0_i32_0 = arith.constant 0 : i32
    %c0_i32_1 = arith.constant 0 : i32
    return %c0_i32, %c0_i32_0 : i32, i32
  }
  func.func @transform_6(%arg0: i32) -> (i32, i32) {
    %c0_i32 = arith.constant 0 : i32
    %c0_i32_0 = arith.constant 0 : i32
    return %arg0, %c0_i32 : i32, i32
  }
}

</mosaic_0001>

<bundles_post_ra>
// kernel: tpu_custom_call.1
= control target key start
LH: loop header
LB: loop body
LE: loop exit
PB: predicated region body
PF: predicated region fallthrough
CT: control target
= control target key end

     0   :  { %11 = vsyncpa [#allocation3], 0  ;;  %s643_s0 = inlined_call_operand.hbm [shape: f32[32,128], index: 0, kind: input, shape index: {}]   ;;  %s644_s1 = inlined_call_operand.hbm [shape: f32[32,128], index: 1, kind: input, shape index: {}]   ;;  %s645_s2 = inlined_call_operand.hbm [shape: f32[128,128], index: 2, kind: input, shape index: {}]   ;;  %s646_s3 = inlined_call_operand.vmem [shape: f32[1,128], index: 3, kind: input, shape index: {}]   ;;  %s647_s4 = inlined_call_operand.vmem [shape: f32[1,128], index: 4, kind: input, shape index: {}]   ;;  %s648_s5 = inlined_call_operand.vmem [shape: f32[1,128], index: 5, kind: input, shape index: {}]   ;;  %s649_s6 = inlined_call_operand.hbm [shape: f32[32,128], index: 6, kind: output, shape index: {}]  }
   0x1   :  { %12 = vsyncpa [#allocation6], 0 }
   0x2   :  { %13 = vsyncpa [#allocation4], 0  ;;  %s514_s21 = smov [#allocation5]   ;;  %s515_s23 = smov [#allocation2]  }
   0x3   :  { %s31_s22 = sshll.u32 %s514_s21, 4  ;;  %s19_s24 = sshll.u32 %s515_s23, 4  ;;  %s32_s22 = int_to_ptr.vmem [resolvable:$true] %s31_s22  ;;  %s555_s24 = int_to_ptr.vmem [resolvable:$true] %s19_s24 }
   0x4   :  { %s420_s27 = scalar_lea.hbm %s644_s1, 512 }
   0x5   :  { %p421_p0 = scmp.ne.s32.totalorder %s644_s1, %s420_s27  ;;  %p424_p1 = scmp.lt.u32.totalorder %s420_s27, %s644_s1 }
   0x7   :  { %p426_p2 = pnand %p424_p1, %p421_p0 }
   0x9   :  { %429 = shalt.err (!%p426_p2)
}
   0xa   :  { %s430_s8 = scalar_lea.vmem %s32_s22, 512  ;;  %p435_p4 = scmp.lt.s32.totalorder %s32_s22, %s32_s22 }
   0xb   :  { %p431_p3 = scmp.ne.s32.totalorder %s32_s22, %s430_s8  ;;  %p436_p5 = scmp.lt.s32.totalorder %s430_s8, %s430_s8 }
   0xd   :  { %p437_p6 = por %p436_p5, %p435_p4 }
   0xf   :  { %p438_p7 = pnand %p437_p6, %p431_p3 }
  0x11   :  { %441 = shalt.err (!%p438_p7)
}
  0x12   :  { %s516_s9 = smov 128   ;;  %s517_s10 = smov 8  }
  0x13   :  { %37 = dma.hbm_to_vmem [thread:$0]  %s644_s1, 512, %s32_s22, [#allocation6], %s516_s9, %s516_s9, %s517_s10  }
  0x14   :  { %s442_s15 = scalar_lea.hbm %s643_s0, 512 }
  0x15   :  { %p443_p8 = scmp.ne.s32.totalorder %s643_s0, %s442_s15  ;;  %p446_p9 = scmp.lt.u32.totalorder %s442_s15, %s643_s0 }
  0x17   :  { %p448_p10 = pnand %p446_p9, %p443_p8 }
  0x19   :  { %451 = shalt.err (!%p448_p10)
}
  0x1a   :  { %s452_s20 = scalar_lea.vmem %s555_s24, 512  ;;  %p457_p12 = scmp.lt.s32.totalorder %s555_s24, %s555_s24 }
  0x1b   :  { %p453_p11 = scmp.ne.s32.totalorder %s555_s24, %s452_s20  ;;  %p458_p13 = scmp.lt.s32.totalorder %s452_s20, %s452_s20 }
  0x1d   :  { %p459_p0 = por %p458_p13, %p457_p12 }
  0x1f   :  { %p460_p1 = pnand %p459_p0, %p453_p11 }
  0x21   :  { %463 = shalt.err (!%p460_p1)
}
  0x22   :  { %25 = dma.hbm_to_vmem [thread:$0]  %s643_s0, 512, %s555_s24, [#allocation3], %s516_s9, %s516_s9, %s517_s10  }
  0x23   :  { %s518_s22 = smov [#allocation7]   ;;  %s464_s27 = scalar_lea.hbm %s645_s2, 2048 }
  0x24   :  { %s43_s23 = sshll.u32 %s518_s22, 4  ;;  %p465_p2 = scmp.ne.s32.totalorder %s645_s2, %s464_s27  ;;  %s44_s23 = int_to_ptr.vmem [resolvable:$true] %s43_s23 }
  0x25   :  { %p468_p3 = scmp.lt.u32.totalorder %s464_s27, %s645_s2 }
  0x27   :  { %p470_p4 = pnand %p468_p3, %p465_p2 }
  0x29   :  { %473 = shalt.err (!%p470_p4)
}
  0x2a   :  { %s474_s8 = scalar_lea.vmem %s44_s23, 2048  ;;  %p479_p6 = scmp.lt.s32.totalorder %s44_s23, %s44_s23 }
  0x2b   :  { %p475_p5 = scmp.ne.s32.totalorder %s44_s23, %s474_s8  ;;  %p480_p7 = scmp.lt.s32.totalorder %s474_s8, %s474_s8 }
  0x2d   :  { %p481_p8 = por %p480_p7, %p479_p6 }
  0x2f   :  { %p482_p9 = pnand %p481_p8, %p475_p5 }
  0x31   :  { %485 = shalt.err (!%p482_p9)
}
  0x32   :  { %49 = dma.hbm_to_vmem [thread:$0]  %s645_s2, 2048, %s44_s23, [#allocation6], %s516_s9, %s516_s9, %s517_s10  }
  0x33   :  { %508 = dma.done.wait [#allocation3], 512  }
  0x34   :  { %509 = vsyncadd [#allocation3], 4294966784 }
  0x35   :  { %510 = dma.done.wait [#allocation6], 2560  }
  0x36   :  { %511 = vsyncadd [#allocation6], 4294964736  ;;  %v69_v0 = vld [vmem:[#allocation7] sm:$0xff]  ;;  %v70_v1 = vld [vmem:[#allocation7 + $0x8] sm:$0xff] }
  0x37   :  { %v71_v2 = vld [vmem:[#allocation7 + $0x10] sm:$0xff]  ;;  %v358_v3 = vpack.c.bf16 %v70_v1, %v69_v0  ;;  %v72_v4 = vld [vmem:[#allocation7 + $0x18] sm:$0xff]  ;;  %v73_v6 = vld [vmem:[#allocation7 + $0x20] sm:$0xff] }
  0x38   :  { %v362_v5 = vpack.c.bf16 %v72_v4, %v71_v2  ;;  %v74_v7 = vld [vmem:[#allocation7 + $0x28] sm:$0xff]  ;;  %v65_v9 = vld [vmem:[#allocation2] sm:$0xff]  ;;  %v67_v10 = vld [vmem:[#allocation2 + $0x10] sm:$0xff] }
  0x39   :  { %359 = vmatprep.subr.bf16.mxu0 %v358_v3  ;;  %390 = vmatprep.subr.bf16.mxu1 %v358_v3  ;;  %v366_v8 = vpack.c.bf16 %v74_v7, %v73_v6  ;;  %v75_v11 = vld [vmem:[#allocation7 + $0x30] sm:$0xff]  ;;  %v76_v12 = vld [vmem:[#allocation7 + $0x38] sm:$0xff]  ;;  %v77_v14 = vld [vmem:[#allocation7 + $0x40] sm:$0xff] }
  0x3a   :  { %361 = vmatpush3.bf16.msra.mxu0 %v358_v3  ;;  %398 = vmatpush3.bf16.msra.mxu1 %v358_v3  ;;  %v370_v13 = vpack.c.bf16 %v76_v12, %v75_v11  ;;  %v78_v15 = vld [vmem:[#allocation7 + $0x48] sm:$0xff]  ;;  %v79_v17 = vld [vmem:[#allocation7 + $0x50] sm:$0xff]  ;;  %v80_v18 = vld [vmem:[#allocation7 + $0x58] sm:$0xff] }
  0x3b   :  { %363 = vmatprep.subr.bf16.mxu0 %v362_v5  ;;  %391 = vmatprep.subr.bf16.mxu1 %v362_v5  ;;  %v374_v16 = vpack.c.bf16 %v78_v15, %v77_v14  ;;  %v378_v19 = vpack.c.bf16 %v80_v18, %v79_v17  ;;  %v81_v20 = vld [vmem:[#allocation7 + $0x60] sm:$0xff]  ;;  %v82_v21 = vld [vmem:[#allocation7 + $0x68] sm:$0xff]  ;;  %v83_v23 = vld [vmem:[#allocation7 + $0x70] sm:$0xff] }
  0x3c   :  { %352 = vmatprep.mubr.f32.mxu0 %v65_v9  ;;  %355 = vmatprep.mubr.f32.mxu1 %v67_v10  ;;  %v382_v22 = vpack.c.bf16 %v82_v21, %v81_v20  ;;  %v84_v24 = vld [vmem:[#allocation7 + $0x78] sm:$0xff]  ;;  %v66_v26 = vld [vmem:[#allocation2 + $0x8] sm:$0xff]  ;;  %v170_v30 = vld [vmem:[#allocation5] sm:$0xff] }
  0x3d   :  { %v386_v25 = vpack.c.bf16 %v84_v24, %v83_v23  ;;  %v68_v27 = vld [vmem:[#allocation2 + $0x18] sm:$0xff]  ;;  %v171_v28 = vld [vmem:[#allocation5 + $0x8] sm:$0xff]  ;;  %v172_v31 = vld [vmem:[#allocation5 + $0x10] sm:$0xff]  ;;  %v179_v36 = vmul.f32 0.3, %v170_v30 }
  0x3e   :  { %365 = vmatpush3.bf16.msra.mxu0 %v362_v5  ;;  %399 = vmatpush3.bf16.msra.mxu1 %v362_v5  ;;  %v173_v29 = vld [vmem:[#allocation5 + $0x18] sm:$0xff]  ;;  %v180_v32 = vmul.f32 0.3, %v171_v28  ;;  %v181_v37 = vmul.f32 0.3, %v172_v31 }
  0x3f   :  { %367 = vmatprep.subr.bf16.mxu0 %v366_v8  ;;  %392 = vmatprep.subr.bf16.mxu1 %v366_v8  ;;  %v182_v33 = vmul.f32 0.3, %v173_v29  ;;  %v297_v42 = vld [vmem:[%s646_s3] ss:$0 sm:$0xff] }
  0x40   :  { %v299_v31 = vld [vmem:[%s648_s5] ss:$0 sm:$0xff] }
  0x42   :  { %369 = vmatpush3.bf16.msra.mxu0 %v366_v8  ;;  %400 = vmatpush3.bf16.msra.mxu1 %v366_v8 }
  0x43   :  { %371 = vmatprep.subr.bf16.mxu0 %v370_v13  ;;  %393 = vmatprep.subr.bf16.mxu1 %v370_v13 }
  0x46   :  { %373 = vmatpush3.bf16.msra.mxu0 %v370_v13  ;;  %401 = vmatpush3.bf16.msra.mxu1 %v370_v13 }
  0x47   :  { %375 = vmatprep.subr.bf16.mxu0 %v374_v16  ;;  %394 = vmatprep.subr.bf16.mxu1 %v374_v16 }
  0x4a   :  { %377 = vmatpush3.bf16.msra.mxu0 %v374_v16  ;;  %402 = vmatpush3.bf16.msra.mxu1 %v374_v16 }
  0x4b   :  { %379 = vmatprep.subr.bf16.mxu0 %v378_v19  ;;  %395 = vmatprep.subr.bf16.mxu1 %v378_v19 }
  0x4e   :  { %381 = vmatpush3.bf16.msra.mxu0 %v378_v19  ;;  %403 = vmatpush3.bf16.msra.mxu1 %v378_v19 }
  0x4f   :  { %383 = vmatprep.subr.bf16.mxu0 %v382_v22  ;;  %396 = vmatprep.subr.bf16.mxu1 %v382_v22 }
  0x52   :  { %385 = vmatpush3.bf16.msra.mxu0 %v382_v22  ;;  %404 = vmatpush3.bf16.msra.mxu1 %v382_v22 }
  0x53   :  { %387 = vmatprep.subr.bf16.mxu0 %v386_v25  ;;  %397 = vmatprep.subr.bf16.mxu1 %v386_v25 }
  0x56   :  { %389 = vmatpush3.bf16.msra.mxu0 %v386_v25  ;;  %405 = vmatpush3.bf16.msra.mxu1 %v386_v25  ;;  %v298_v25 = vld [vmem:[%s647_s4] ss:$0 sm:$0xff]  ;;  %s519_s4 = smov [#allocation8]  }
  0x57   :  { %s284_s15 = sshll.u32 %s519_s4, 4  ;;  %s285_s15 = int_to_ptr.vmem [resolvable:$true] %s284_s15 }
  0x58   :  { %s486_s5 = scalar_lea.vmem %s285_s15, 512  ;;  %p491_p11 = scmp.lt.s32.totalorder %s285_s15, %s285_s15 }
  0x59   :  { %353 = vmatmul.mubr.f32.vlgmr.msra.gmra.mrb[0].mxu0 %v66_v26  ;;  %356 = vmatmul.mubr.f32.vlgmr.msra.gmra.mrb[0].mxu1 %v68_v27  ;;  %p487_p10 = scmp.ne.s32.totalorder %s285_s15, %s486_s5  ;;  %p492_p12 = scmp.lt.s32.totalorder %s486_s5, %s486_s5 }
  0x5b   :  { %p493_p13 = por %p492_p12, %p491_p11 }
  0x5d   :  { %p494_p0 = pnand %p493_p13, %p487_p10 }
 0x12c   :  { %v354_v34 = vpop.f32.mrb[0].mxu0  ;;  %v357_v35 = vpop.f32.mrb[0].mxu1 }
 0x12d   :  { %v176_v38 = vmul.f32 0.7, %v354_v34  ;;  %v178_v39 = vmul.f32 0.7, %v357_v35  ;;  %v151_v40 = vpop.f32.mrb[1].mxu0  ;;  %v161_v41 = vpop.f32.mrb[1].mxu1 }
 0x12e   :  { %v175_v43 = vmul.f32 0.7, %v151_v40  ;;  %v177_v44 = vmul.f32 0.7, %v161_v41 }
 0x12f   :  { %v184_v45 = vadd.f32 %v180_v32, %v176_v38  ;;  %v186_v46 = vadd.f32 %v182_v33, %v178_v39 }
 0x130   :  { %v183_v47 = vadd.f32 %v179_v36, %v175_v43  ;;  %v185_v48 = vadd.f32 %v181_v37, %v177_v44 }
 0x131   :  { %v610_v49 = vadd.f32 %v297_v42, %v186_v46  ;;  %v194_v50 = vadd.f32 %v297_v42, %v184_v45 }
 0x132   :  { %v193_v51 = vadd.f32 %v297_v42, %v183_v47  ;;  %v613_v52 = vadd.f32 %v297_v42, %v185_v48 }
 0x133   :  { %203 = vadd.xlane.f32.xlu1 %v610_v49  ;;  %199 = vadd.xlane.f32.xlu0 %v194_v50  ;;  %v206_v53 = vmul.f32 %v194_v50, %v194_v50  ;;  %v208_v55 = vmul.f32 %v610_v49, %v610_v49 }
 0x134   :  { %v205_v54 = vmul.f32 %v193_v51, %v193_v51  ;;  %v207_v56 = vmul.f32 %v613_v52, %v613_v52 }
 0x137   :  { %201 = vadd.xlane.f32.xlu1 %v613_v52  ;;  %197 = vadd.xlane.f32.xlu0 %v193_v51 }
 0x13b   :  { %211 = vadd.xlane.f32.xlu1 %v206_v53  ;;  %209 = vadd.xlane.f32.xlu0 %v205_v54 }
 0x13f   :  { %215 = vadd.xlane.f32.xlu1 %v208_v55  ;;  %213 = vadd.xlane.f32.xlu0 %v207_v56 }
 0x1c0   :  { %v204_v57 = vpop.xlane.xlu1 %203  ;;  %v200_v58 = vpop.xlane.xlu0 %199 }
 0x1c1   :  { %v218_v61 = vmul.f32 0.0078125, %v200_v58  ;;  %v220_v63 = vmul.f32 0.0078125, %v204_v57 }
 0x1c3   :  { %v226_v3 = vmul.f32 %v218_v61, %v218_v61  ;;  %v228_v9 = vmul.f32 %v220_v63, %v220_v63  ;;  %v248_v28 = vsub.f32 %v194_v50, %v218_v61  ;;  %v250_v37 = vsub.f32 %v610_v49, %v220_v63 }
 0x1c4   :  { %v202_v59 = vpop.xlane.xlu1 %201  ;;  %v198_v60 = vpop.xlane.xlu0 %197 }
 0x1c5   :  { %v217_v62 = vmul.f32 0.0078125, %v198_v60  ;;  %v219_v0 = vmul.f32 0.0078125, %v202_v59 }
 0x1c7   :  { %v225_v4 = vmul.f32 %v217_v62, %v217_v62  ;;  %v227_v10 = vmul.f32 %v219_v0, %v219_v0  ;;  %v247_v30 = vsub.f32 %v193_v51, %v217_v62  ;;  %v249_v40 = vsub.f32 %v613_v52, %v219_v0 }
 0x1c8   :  { %v212_v1 = vpop.xlane.xlu1 %211  ;;  %v210_v2 = vpop.xlane.xlu0 %209 }
 0x1c9   :  { %v222_v5 = vmul.f32 0.0078125, %v212_v1  ;;  %v221_v6 = vmul.f32 0.0078125, %v210_v2 }
 0x1cb   :  { %v230_v7 = vsub.f32 %v222_v5, %v226_v3  ;;  %v229_v8 = vsub.f32 %v221_v6, %v225_v4 }
 0x1cc   :  { %v216_v11 = vpop.xlane.xlu1 %215  ;;  %v214_v12 = vpop.xlane.xlu0 %213 }
 0x1cd   :  { %v234_v13 = vmax.f32 %v230_v7, 0.0  ;;  %v233_v14 = vmax.f32 %v229_v8, 0.0  ;;  %v224_v15 = vmul.f32 0.0078125, %v216_v11  ;;  %v223_v16 = vmul.f32 0.0078125, %v214_v12 }
 0x1cf   :  { %v238_v17 = vadd.f32 1e-12, %v234_v13  ;;  %v237_v18 = vadd.f32 1e-12, %v233_v14  ;;  %v232_v19 = vsub.f32 %v224_v15, %v228_v9  ;;  %v231_v20 = vsub.f32 %v223_v16, %v227_v10 }
 0x1d1   :  { %412 = vrsqrt.f32 %v238_v17  ;;  %v236_v21 = vmax.f32 %v232_v19, 0.0  ;;  %v235_v22 = vmax.f32 %v231_v20, 0.0 }
 0x1d2   :  { %414 = vrsqrt.f32 %v237_v18 }
 0x1d3   :  { %v240_v23 = vadd.f32 1e-12, %v236_v21  ;;  %v239_v24 = vadd.f32 1e-12, %v235_v22 }
 0x1d5   :  { %416 = vrsqrt.f32 %v240_v23 }
 0x1d6   :  { %418 = vrsqrt.f32 %v239_v24 }
 0x1db   :  { %v413_v26 = vpop.eup %412 }
 0x1dc   :  { %v415_v27 = vpop.eup %414  ;;  %v258_v29 = vmul.f32 %v413_v26, %v298_v25 }
 0x1dd   :  { %v257_v32 = vmul.f32 %v415_v27, %v298_v25 }
 0x1de   :  { %v262_v33 = vmul.f32 %v258_v29, %v248_v28 }
 0x1df   :  { %v417_v34 = vpop.eup %416  ;;  %v261_v35 = vmul.f32 %v257_v32, %v247_v30 }
 0x1e0   :  { %v419_v36 = vpop.eup %418  ;;  %v260_v38 = vmul.f32 %v417_v34, %v298_v25  ;;  %v272_v39 = vadd.f32 %v299_v31, %v262_v33 }
 0x1e1   :  { %v259_v41 = vmul.f32 %v419_v36, %v298_v25  ;;  %v271_v42 = vadd.f32 %v299_v31, %v261_v35 }
 0x1e2   :  { %v264_v43 = vmul.f32 %v260_v38, %v250_v37  ;;  %276 = vst [vmem:[#allocation8 + $0x8] sm:$0xff] %v272_v39 }
 0x1e3   :  { %v263_v44 = vmul.f32 %v259_v41, %v249_v40  ;;  %275 = vst [vmem:[#allocation8] sm:$0xff] %v271_v42 }
 0x1e4   :  { %v274_v45 = vadd.f32 %v299_v31, %v264_v43 }
 0x1e5   :  { %v273_v46 = vadd.f32 %v299_v31, %v263_v44 }
 0x1e6   :  { %278 = vst [vmem:[#allocation8 + $0x18] sm:$0xff] %v274_v45 }
 0x1e7   :  { %277 = vst [vmem:[#allocation8 + $0x10] sm:$0xff] %v273_v46 }
 0x1e8   :  { %497 = shalt.err (!%p494_p0)
}
 0x1e9   :  { %s498_s18 = scalar_lea.hbm %s649_s6, 512 }
 0x1ea   :  { %p499_p1 = scmp.ne.s32.totalorder %s649_s6, %s498_s18  ;;  %p502_p2 = scmp.lt.u32.totalorder %s498_s18, %s649_s6 }
 0x1ec   :  { %p504_p3 = pnand %p502_p2, %p499_p1 }
 0x1ee   :  { %507 = shalt.err (!%p504_p3)
}
 0x1ef   :  { %290 = dma.vmem_to_hbm [thread:$0]  %s285_s15, 512, %s649_s6, [#allocation4], %s516_s9, %s516_s9, %s517_s10  }
 0x1f0   :  { %512 = dma.done.wait [#allocation4], 512  }
 0x1f1   :  { %513 = vsyncadd [#allocation4], 4294966784 }
 0x1f2   :  { %294 = vsyncpa [#allocation3], 1 }
 0x1f3   :  { %295 = vsyncpa [#allocation6], 1 }
 0x1f4   :  { %296 = vsyncpa [#allocation4], 1 }

// kernel: tpu_custom_call.1
= control target key start
LH: loop header
LB: loop body
LE: loop exit
PB: predicated region body
PF: predicated region fallthrough
CT: control target
= control target key end

     0   :  { %11 = vsyncpa [#allocation3], 0  ;;  %s643_s0 = inlined_call_operand.hbm [shape: f32[32,128], index: 0, kind: input, shape index: {}]   ;;  %s644_s1 = inlined_call_operand.hbm [shape: f32[32,128], index: 1, kind: input, shape index: {}]   ;;  %s645_s2 = inlined_call_operand.hbm [shape: f32[128,128], index: 2, kind: input, shape index: {}]   ;;  %s646_s3 = inlined_call_operand.vmem [shape: f32[1,128], index: 3, kind: input, shape index: {}]   ;;  %s647_s4 = inlined_call_operand.vmem [shape: f32[1,128], index: 4, kind: input, shape index: {}]   ;;  %s648_s5 = inlined_call_operand.vmem [shape: f32[1,128], index: 5, kind: input, shape index: {}]   ;;  %s649_s6 = inlined_call_operand.hbm [shape: f32[32,128], index: 6, kind: output, shape index: {}]  }
   0x1   :  { %12 = vsyncpa [#allocation6], 0 }
   0x2   :  { %13 = vsyncpa [#allocation4], 0  ;;  %s514_s21 = smov [#allocation5]   ;;  %s515_s23 = smov [#allocation2]  }
   0x3   :  { %s31_s22 = sshll.u32 %s514_s21, 4  ;;  %s19_s24 = sshll.u32 %s515_s23, 4  ;;  %s32_s22 = int_to_ptr.vmem [resolvable:$true] %s31_s22  ;;  %s555_s24 = int_to_ptr.vmem [resolvable:$true] %s19_s24 }
   0x4   :  { %s420_s27 = scalar_lea.hbm %s644_s1, 512 }
   0x5   :  { %p421_p0 = scmp.ne.s32.totalorder %s644_s1, %s420_s27  ;;  %p424_p1 = scmp.lt.u32.totalorder %s420_s27, %s644_s1 }
   0x7   :  { %p426_p2 = pnand %p424_p1, %p421_p0 }
   0x9   :  { %429 = shalt.err (!%p426_p2)
}
   0xa   :  { %s430_s8 = scalar_lea.vmem %s32_s22, 512  ;;  %p435_p4 = scmp.lt.s32.totalorder %s32_s22, %s32_s22 }
   0xb   :  { %p431_p3 = scmp.ne.s32.totalorder %s32_s22, %s430_s8  ;;  %p436_p5 = scmp.lt.s32.totalorder %s430_s8, %s430_s8 }
   0xd   :  { %p437_p6 = por %p436_p5, %p435_p4 }
   0xf   :  { %p438_p7 = pnand %p437_p6, %p431_p3 }
  0x11   :  { %441 = shalt.err (!%p438_p7)
}
  0x12   :  { %s516_s9 = smov 128   ;;  %s517_s10 = smov 8  }
  0x13   :  { %37 = dma.hbm_to_vmem [thread:$0]  %s644_s1, 512, %s32_s22, [#allocation6], %s516_s9, %s516_s9, %s517_s10  }
  0x14   :  { %s442_s15 = scalar_lea.hbm %s643_s0, 512 }
  0x15   :  { %p443_p8 = scmp.ne.s32.totalorder %s643_s0, %s442_s15  ;;  %p446_p9 = scmp.lt.u32.totalorder %s442_s15, %s643_s0 }
  0x17   :  { %p448_p10 = pnand %p446_p9, %p443_p8 }
  0x19   :  { %451 = shalt.err (!%p448_p10)
}
  0x1a   :  { %s452_s20 = scalar_lea.vmem %s555_s24, 512  ;;  %p457_p12 = scmp.lt.s32.totalorder %s555_s24, %s555_s24 }
  0x1b   :  { %p453_p11 = scmp.ne.s32.totalorder %s555_s24, %s452_s20  ;;  %p458_p13 = scmp.lt.s32.totalorder %s452_s20, %s452_s20 }
  0x1d   :  { %p459_p0 = por %p458_p13, %p457_p12 }
  0x1f   :  { %p460_p1 = pnand %p459_p0, %p453_p11 }
  0x21   :  { %463 = shalt.err (!%p460_p1)
}
  0x22   :  { %25 = dma.hbm_to_vmem [thread:$0]  %s643_s0, 512, %s555_s24, [#allocation3], %s516_s9, %s516_s9, %s517_s10  }
  0x23   :  { %s518_s22 = smov [#allocation7]   ;;  %s464_s27 = scalar_lea.hbm %s645_s2, 2048 }
  0x24   :  { %s43_s23 = sshll.u32 %s518_s22, 4  ;;  %p465_p2 = scmp.ne.s32.totalorder %s645_s2, %s464_s27  ;;  %s44_s23 = int_to_ptr.vmem [resolvable:$true] %s43_s23 }
  0x25   :  { %p468_p3 = scmp.lt.u32.totalorder %s464_s27, %s645_s2 }
  0x27   :  { %p470_p4 = pnand %p468_p3, %p465_p2 }
  0x29   :  { %473 = shalt.err (!%p470_p4)
}
  0x2a   :  { %s474_s8 = scalar_lea.vmem %s44_s23, 2048  ;;  %p479_p6 = scmp.lt.s32.totalorder %s44_s23, %s44_s23 }
  0x2b   :  { %p475_p5 = scmp.ne.s32.totalorder %s44_s23, %s474_s8  ;;  %p480_p7 = scmp.lt.s32.totalorder %s474_s8, %s474_s8 }
  0x2d   :  { %p481_p8 = por %p480_p7, %p479_p6 }
  0x2f   :  { %p482_p9 = pnand %p481_p8, %p475_p5 }
  0x31   :  { %485 = shalt.err (!%p482_p9)
}
  0x32   :  { %49 = dma.hbm_to_vmem [thread:$0]  %s645_s2, 2048, %s44_s23, [#allocation6], %s516_s9, %s516_s9, %s517_s10  }
  0x33   :  { %508 = dma.done.wait [#allocation3], 512  }
  0x34   :  { %509 = vsyncadd [#allocation3], 4294966784 }
  0x35   :  { %510 = dma.done.wait [#allocation6], 2560  }
  0x36   :  { %511 = vsyncadd [#allocation6], 4294964736  ;;  %v69_v0 = vld [vmem:[#allocation7] sm:$0xff]  ;;  %v70_v1 = vld [vmem:[#allocation7 + $0x8] sm:$0xff] }
  0x37   :  { %v71_v2 = vld [vmem:[#allocation7 + $0x10] sm:$0xff]  ;;  %v358_v3 = vpack.c.bf16 %v70_v1, %v69_v0  ;;  %v72_v4 = vld [vmem:[#allocation7 + $0x18] sm:$0xff]  ;;  %v73_v6 = vld [vmem:[#allocation7 + $0x20] sm:$0xff] }
  0x38   :  { %v362_v5 = vpack.c.bf16 %v72_v4, %v71_v2  ;;  %v74_v7 = vld [vmem:[#allocation7 + $0x28] sm:$0xff]  ;;  %v65_v9 = vld [vmem:[#allocation2] sm:$0xff]  ;;  %v67_v10 = vld [vmem:[#allocation2 + $0x10] sm:$0xff] }
  0x39   :  { %359 = vmatprep.subr.bf16.mxu0 %v358_v3  ;;  %390 = vmatprep.subr.bf16.mxu1 %v358_v3  ;;  %v366_v8 = vpack.c.bf16 %v74_v7, %v73_v6  ;;  %v75_v11 = vld [vmem:[#allocation7 + $0x30] sm:$0xff]  ;;  %v76_v12 = vld [vmem:[#allocation7 + $0x38] sm:$0xff]  ;;  %v77_v14 = vld [vmem:[#allocation7 + $0x40] sm:$0xff] }
  0x3a   :  { %361 = vmatpush3.bf16.msra.mxu0 %v358_v3  ;;  %398 = vmatpush3.bf16.msra.mxu1 %v358_v3  ;;  %v370_v13 = vpack.c.bf16 %v76_v12, %v75_v11  ;;  %v78_v15 = vld [vmem:[#allocation7 + $0x48] sm:$0xff]  ;;  %v79_v17 = vld [vmem:[#allocation7 + $0x50] sm:$0xff]  ;;  %v80_v18 = vld [vmem:[#allocation7 + $0x58] sm:$0xff] }
  0x3b   :  { %363 = vmatprep.subr.bf16.mxu0 %v362_v5  ;;  %391 = vmatprep.subr.bf16.mxu1 %v362_v5  ;;  %v374_v16 = vpack.c.bf16 %v78_v15, %v77_v14  ;;  %v378_v19 = vpack.c.bf16 %v80_v18, %v79_v17  ;;  %v81_v20 = vld [vmem:[#allocation7 + $0x60] sm:$0xff]  ;;  %v82_v21 = vld [vmem:[#allocation7 + $0x68] sm:$0xff]  ;;  %v83_v23 = vld [vmem:[#allocation7 + $0x70] sm:$0xff] }
  0x3c   :  { %352 = vmatprep.mubr.f32.mxu0 %v65_v9  ;;  %355 = vmatprep.mubr.f32.mxu1 %v67_v10  ;;  %v382_v22 = vpack.c.bf16 %v82_v21, %v81_v20  ;;  %v84_v24 = vld [vmem:[#allocation7 + $0x78] sm:$0xff]  ;;  %v66_v26 = vld [vmem:[#allocation2 + $0x8] sm:$0xff]  ;;  %v170_v30 = vld [vmem:[#allocation5] sm:$0xff] }
  0x3d   :  { %v386_v25 = vpack.c.bf16 %v84_v24, %v83_v23  ;;  %v68_v27 = vld [vmem:[#allocation2 + $0x18] sm:$0xff]  ;;  %v171_v28 = vld [vmem:[#allocation5 + $0x8] sm:$0xff]  ;;  %v172_v31 = vld [vmem:[#allocation5 + $0x10] sm:$0xff]  ;;  %v179_v36 = vmul.f32 0.3, %v170_v30 }
  0x3e   :  { %365 = vmatpush3.bf16.msra.mxu0 %v362_v5  ;;  %399 = vmatpush3.bf16.msra.mxu1 %v362_v5  ;;  %v173_v29 = vld [vmem:[#allocation5 + $0x18] sm:$0xff]  ;;  %v180_v32 = vmul.f32 0.3, %v171_v28  ;;  %v181_v37 = vmul.f32 0.3, %v172_v31 }
  0x3f   :  { %367 = vmatprep.subr.bf16.mxu0 %v366_v8  ;;  %392 = vmatprep.subr.bf16.mxu1 %v366_v8  ;;  %v182_v33 = vmul.f32 0.3, %v173_v29  ;;  %v297_v42 = vld [vmem:[%s646_s3] ss:$0 sm:$0xff] }
  0x40   :  { %v299_v31 = vld [vmem:[%s648_s5] ss:$0 sm:$0xff] }
  0x42   :  { %369 = vmatpush3.bf16.msra.mxu0 %v366_v8  ;;  %400 = vmatpush3.bf16.msra.mxu1 %v366_v8 }
  0x43   :  { %371 = vmatprep.subr.bf16.mxu0 %v370_v13  ;;  %393 = vmatprep.subr.bf16.mxu1 %v370_v13 }
  0x46   :  { %373 = vmatpush3.bf16.msra.mxu0 %v370_v13  ;;  %401 = vmatpush3.bf16.msra.mxu1 %v370_v13 }
  0x47   :  { %375 = vmatprep.subr.bf16.mxu0 %v374_v16  ;;  %394 = vmatprep.subr.bf16.mxu1 %v374_v16 }
  0x4a   :  { %377 = vmatpush3.bf16.msra.mxu0 %v374_v16  ;;  %402 = vmatpush3.bf16.msra.mxu1 %v374_v16 }
  0x4b   :  { %379 = vmatprep.subr.bf16.mxu0 %v378_v19  ;;  %395 = vmatprep.subr.bf16.mxu1 %v378_v19 }
  0x4e   :  { %381 = vmatpush3.bf16.msra.mxu0 %v378_v19  ;;  %403 = vmatpush3.bf16.msra.mxu1 %v378_v19 }
  0x4f   :  { %383 = vmatprep.subr.bf16.mxu0 %v382_v22  ;;  %396 = vmatprep.subr.bf16.mxu1 %v382_v22 }
  0x52   :  { %385 = vmatpush3.bf16.msra.mxu0 %v382_v22  ;;  %404 = vmatpush3.bf16.msra.mxu1 %v382_v22 }
  0x53   :  { %387 = vmatprep.subr.bf16.mxu0 %v386_v25  ;;  %397 = vmatprep.subr.bf16.mxu1 %v386_v25 }
  0x56   :  { %389 = vmatpush3.bf16.msra.mxu0 %v386_v25  ;;  %405 = vmatpush3.bf16.msra.mxu1 %v386_v25  ;;  %v298_v25 = vld [vmem:[%s647_s4] ss:$0 sm:$0xff]  ;;  %s519_s4 = smov [#allocation8]  }
  0x57   :  { %s284_s15 = sshll.u32 %s519_s4, 4  ;;  %s285_s15 = int_to_ptr.vmem [resolvable:$true] %s284_s15 }
  0x58   :  { %s486_s5 = scalar_lea.vmem %s285_s15, 512  ;;  %p491_p11 = scmp.lt.s32.totalorder %s285_s15, %s285_s15 }
  0x59   :  { %353 = vmatmul.mubr.f32.vlgmr.msra.gmra.mrb[0].mxu0 %v66_v26  ;;  %356 = vmatmul.mubr.f32.vlgmr.msra.gmra.mrb[0].mxu1 %v68_v27  ;;  %p487_p10 = scmp.ne.s32.totalorder %s285_s15, %s486_s5  ;;  %p492_p12 = scmp.lt.s32.totalorder %s486_s5, %s486_s5 }
  0x5b   :  { %p493_p13 = por %p492_p12, %p491_p11 }
  0x5d   :  { %p494_p0 = pnand %p493_p13, %p487_p10 }
 0x12c   :  { %v354_v34 = vpop.f32.mrb[0].mxu0  ;;  %v357_v35 = vpop.f32.mrb[0].mxu1 }
 0x12d   :  { %v176_v38 = vmul.f32 0.7, %v354_v34  ;;  %v178_v39 = vmul.f32 0.7, %v357_v35  ;;  %v151_v40 = vpop.f32.mrb[1].mxu0  ;;  %v161_v41 = vpop.f32.mrb[1].mxu1 }
 0x12e   :  { %v175_v43 = vmul.f32 0.7, %v151_v40  ;;  %v177_v44 = vmul.f32 0.7, %v161_v41 }
 0x12f   :  { %v184_v45 = vadd.f32 %v180_v32, %v176_v38  ;;  %v186_v46 = vadd.f32 %v182_v33, %v178_v39 }
 0x130   :  { %v183_v47 = vadd.f32 %v179_v36, %v175_v43  ;;  %v185_v48 = vadd.f32 %v181_v37, %v177_v44 }
 0x131   :  { %v610_v49 = vadd.f32 %v297_v42, %v186_v46  ;;  %v194_v50 = vadd.f32 %v297_v42, %v184_v45 }
 0x132   :  { %v193_v51 = vadd.f32 %v297_v42, %v183_v47  ;;  %v613_v52 = vadd.f32 %v297_v42, %v185_v48 }
 0x133   :  { %203 = vadd.xlane.f32.xlu1 %v610_v49  ;;  %199 = vadd.xlane.f32.xlu0 %v194_v50  ;;  %v206_v53 = vmul.f32 %v194_v50, %v194_v50  ;;  %v208_v55 = vmul.f32 %v610_v49, %v610_v49 }
 0x134   :  { %v205_v54 = vmul.f32 %v193_v51, %v193_v51  ;;  %v207_v56 = vmul.f32 %v613_v52, %v613_v52 }
 0x137   :  { %201 = vadd.xlane.f32.xlu1 %v613_v52  ;;  %197 = vadd.xlane.f32.xlu0 %v193_v51 }
 0x13b   :  { %211 = vadd.xlane.f32.xlu1 %v206_v53  ;;  %209 = vadd.xlane.f32.xlu0 %v205_v54 }
 0x13f   :  { %215 = vadd.xlane.f32.xlu1 %v208_v55  ;;  %213 = vadd.xlane.f32.xlu0 %v207_v56 }
 0x1c0   :  { %v204_v57 = vpop.xlane.xlu1 %203  ;;  %v200_v58 = vpop.xlane.xlu0 %199 }
 0x1c1   :  { %v218_v61 = vmul.f32 0.0078125, %v200_v58  ;;  %v220_v63 = vmul.f32 0.0078125, %v204_v57 }
 0x1c3   :  { %v226_v3 = vmul.f32 %v218_v61, %v218_v61  ;;  %v228_v9 = vmul.f32 %v220_v63, %v220_v63  ;;  %v248_v28 = vsub.f32 %v194_v50, %v218_v61  ;;  %v250_v37 = vsub.f32 %v610_v49, %v220_v63 }
 0x1c4   :  { %v202_v59 = vpop.xlane.xlu1 %201  ;;  %v198_v60 = vpop.xlane.xlu0 %197 }
 0x1c5   :  { %v217_v62 = vmul.f32 0.0078125, %v198_v60  ;;  %v219_v0 = vmul.f32 0.0078125, %v202_v59 }
 0x1c7   :  { %v225_v4 = vmul.f32 %v217_v62, %v217_v62  ;;  %v227_v10 = vmul.f32 %v219_v0, %v219_v0  ;;  %v247_v30 = vsub.f32 %v193_v51, %v217_v62  ;;  %v249_v40 = vsub.f32 %v613_v52, %v219_v0 }
 0x1c8   :  { %v212_v1 = vpop.xlane.xlu1 %211  ;;  %v210_v2 = vpop.xlane.xlu0 %209 }
 0x1c9   :  { %v222_v5 = vmul.f32 0.0078125, %v212_v1  ;;  %v221_v6 = vmul.f32 0.0078125, %v210_v2 }
 0x1cb   :  { %v230_v7 = vsub.f32 %v222_v5, %v226_v3  ;;  %v229_v8 = vsub.f32 %v221_v6, %v225_v4 }
 0x1cc   :  { %v216_v11 = vpop.xlane.xlu1 %215  ;;  %v214_v12 = vpop.xlane.xlu0 %213 }
 0x1cd   :  { %v234_v13 = vmax.f32 %v230_v7, 0.0  ;;  %v233_v14 = vmax.f32 %v229_v8, 0.0  ;;  %v224_v15 = vmul.f32 0.0078125, %v216_v11  ;;  %v223_v16 = vmul.f32 0.0078125, %v214_v12 }
 0x1cf   :  { %v238_v17 = vadd.f32 1e-12, %v234_v13  ;;  %v237_v18 = vadd.f32 1e-12, %v233_v14  ;;  %v232_v19 = vsub.f32 %v224_v15, %v228_v9  ;;  %v231_v20 = vsub.f32 %v223_v16, %v227_v10 }
 0x1d1   :  { %412 = vrsqrt.f32 %v238_v17  ;;  %v236_v21 = vmax.f32 %v232_v19, 0.0  ;;  %v235_v22 = vmax.f32 %v231_v20, 0.0 }
 0x1d2   :  { %414 = vrsqrt.f32 %v237_v18 }
 0x1d3   :  { %v240_v23 = vadd.f32 1e-12, %v236_v21  ;;  %v239_v24 = vadd.f32 1e-12, %v235_v22 }
 0x1d5   :  { %416 = vrsqrt.f32 %v240_v23 }
 0x1d6   :  { %418 = vrsqrt.f32 %v239_v24 }
 0x1db   :  { %v413_v26 = vpop.eup %412 }
 0x1dc   :  { %v415_v27 = vpop.eup %414  ;;  %v258_v29 = vmul.f32 %v413_v26, %v298_v25 }
 0x1dd   :  { %v257_v32 = vmul.f32 %v415_v27, %v298_v25 }
 0x1de   :  { %v262_v33 = vmul.f32 %v258_v29, %v248_v28 }
 0x1df   :  { %v417_v34 = vpop.eup %416  ;;  %v261_v35 = vmul.f32 %v257_v32, %v247_v30 }
 0x1e0   :  { %v419_v36 = vpop.eup %418  ;;  %v260_v38 = vmul.f32 %v417_v34, %v298_v25  ;;  %v272_v39 = vadd.f32 %v299_v31, %v262_v33 }
 0x1e1   :  { %v259_v41 = vmul.f32 %v419_v36, %v298_v25  ;;  %v271_v42 = vadd.f32 %v299_v31, %v261_v35 }
 0x1e2   :  { %v264_v43 = vmul.f32 %v260_v38, %v250_v37  ;;  %276 = vst [vmem:[#allocation8 + $0x8] sm:$0xff] %v272_v39 }
 0x1e3   :  { %v263_v44 = vmul.f32 %v259_v41, %v249_v40  ;;  %275 = vst [vmem:[#allocation8] sm:$0xff] %v271_v42 }
 0x1e4   :  { %v274_v45 = vadd.f32 %v299_v31, %v264_v43 }
 0x1e5   :  { %v273_v46 = vadd.f32 %v299_v31, %v263_v44 }
 0x1e6   :  { %278 = vst [vmem:[#allocation8 + $0x18] sm:$0xff] %v274_v45 }
 0x1e7   :  { %277 = vst [vmem:[#allocation8 + $0x10] sm:$0xff] %v273_v46 }
 0x1e8   :  { %497 = shalt.err (!%p494_p0)
}
 0x1e9   :  { %s498_s18 = scalar_lea.hbm %s649_s6, 512 }
 0x1ea   :  { %p499_p1 = scmp.ne.s32.totalorder %s649_s6, %s498_s18  ;;  %p502_p2 = scmp.lt.u32.totalorder %s498_s18, %s649_s6 }
 0x1ec   :  { %p504_p3 = pnand %p502_p2, %p499_p1 }
 0x1ee   :  { %507 = shalt.err (!%p504_p3)
}
 0x1ef   :  { %290 = dma.vmem_to_hbm [thread:$0]  %s285_s15, 512, %s649_s6, [#allocation4], %s516_s9, %s516_s9, %s517_s10  }
 0x1f0   :  { %512 = dma.done.wait [#allocation4], 512  }
 0x1f1   :  { %513 = vsyncadd [#allocation4], 4294966784 }
 0x1f2   :  { %294 = vsyncpa [#allocation3], 1 }
 0x1f3   :  { %295 = vsyncpa [#allocation6], 1 }
 0x1f4   :  { %296 = vsyncpa [#allocation4], 1 }

</bundles_post_ra>
